<compile_context>
chip_gen: v6e
topology: v6e:2x2x1
jax: 0.10.0
libtpu: 0.0.40
codegen_flags: <defaults>
</compile_context>

<pallas_src>
import functools

import jax
import jax.numpy as jnp
from jax import lax
from jax.experimental import pallas as pl
from jax.experimental.pallas import tpu as pltpu


_VMEM_LIMIT_BYTES = 32 * 1024 * 1024   # v5e's default scoped VMEM is only 16 MiB


def _round_up(x, m):
    return ((x + m - 1) // m) * m


# ---------------- Pallas kernels ----------------

def _tile_stats(y, *, tile_m, valid_m):
    """Per-channel sum / sum-of-squares of one (tile_m, Coutp) f32 tile.

    Rows past `valid_m` (partial trailing M tile) are masked to zero so they
    never leak into the BatchNorm batch statistics.
    """
    if valid_m % tile_m != 0:
        i = pl.program_id(0)
        rows = lax.broadcasted_iota(jnp.int32, (tile_m, 1), 0)
        y = jnp.where(i * tile_m + rows < valid_m, y, 0.0)
    s = jnp.sum(y, axis=0, keepdims=True)
    ss = jnp.sum(y * y, axis=0, keepdims=True)
    return s, ss


def _conv_stats_kernel_nk1(p_ref, w_ref, y_ref, s_ref, ss_ref, *, tile_m, valid_m):
    """n_k == 1: one MXU pass per M tile, no accumulator scratch / final copy."""
    y = jnp.dot(p_ref[...], w_ref[...], preferred_element_type=jnp.float32)
    y_ref[...] = y.astype(y_ref.dtype)                       # bf16 intermediate
    s, ss = _tile_stats(y, tile_m=tile_m, valid_m=valid_m)
    s_ref[...] = jnp.broadcast_to(s, s_ref.shape)
    ss_ref[...] = jnp.broadcast_to(ss, ss_ref.shape)


def _conv_stats_kernel(p_ref, w_ref, y_ref, s_ref, ss_ref, acc_ref, *,
                       tile_m, valid_m):
    """n_k > 1: K is the trailing 'arbitrary' axis; f32 VMEM accumulator."""
    k = pl.program_id(1)

    @pl.when(k == 0)
    def _():
        acc_ref[...] = jnp.zeros_like(acc_ref)

    acc_ref[...] += jnp.dot(p_ref[...], w_ref[...],
                            preferred_element_type=jnp.float32)

    @pl.when(k == pl.num_programs(1) - 1)
    def _():
        y = acc_ref[...]
        y_ref[...] = y.astype(y_ref.dtype)                    # bf16 intermediate
        s, ss = _tile_stats(y, tile_m=tile_m, valid_m=valid_m)
        s_ref[...] = jnp.broadcast_to(s, s_ref.shape)
        ss_ref[...] = jnp.broadcast_to(ss, ss_ref.shape)


def _bn_relu_kernel(y_ref, scale_ref, shift_ref, o_ref):
    """Folded BatchNorm affine + ReLU on lane-dense (tile_m, Coutp) tiles."""
    y = y_ref[...].astype(jnp.float32)
    o_ref[...] = jnp.maximum(y * scale_ref[...] + shift_ref[...], 0.0)


# ---------------- glue: bf16 patch builder (k > 1 only) ----------------

def _im2col_nhwc_bf16(x, kh, kw, stride, padding, dilation, Ho, Wo, k_pad):
    """Patch buffer (M, kh*kw*C + k_pad), built once, directly in bf16.

    K-order is (ki, kj, ci); the K zero-padding is folded into the same
    concatenation pass (no extra astype / jnp.pad passes over the buffer).
    """
    N, H, W, C = x.shape
    xp = jnp.pad(x, ((0, 0), (padding, padding), (padding, padding), (0, 0)))
    cols = []
    for i in range(kh):
        for j in range(kw):
            cols.append(lax.slice(
                xp,
                (0, i * dilation, j * dilation, 0),
                (N,
                 i * dilation + (Ho - 1) * stride + 1,
                 j * dilation + (Wo - 1) * stride + 1,
                 C),
                (1, stride, stride, 1)))            # (N, Ho, Wo, C)
    if k_pad:
        cols.append(jnp.zeros((N, Ho, Wo, k_pad), x.dtype))
    patches = jnp.concatenate(cols, axis=-1)        # (N, Ho, Wo, K + k_pad)
    return patches.reshape(N * Ho * Wo, kh * kw * C + k_pad)


# ---------------- NHWC core ----------------

def conv_bn_relu_nhwc(x, weight, gamma, beta, *, stride=1, padding=0,
                      dilation=1, groups=1, eps=1e-5, tm=512, tk_max=1024):
    """ConvBNReLU forward, NHWC activations end-to-end (no layout transposes).

    x: (N, H, W, Cin); weight: (Cout, Cin, kh, kw) (PyTorch OIHW layout);
    gamma / beta: (Cout,).  Returns (N, Ho, Wo, Cout) float32.

    Tile guidance: tm=512 works on all generations (keep <=512 on v7x so both
    TensorCores' working sets fit 64 MiB/TC); v5e/v6e can raise tm to 1024 and
    tk_max to 2048 together with _VMEM_LIMIT_BYTES.
    """
    N, H, W, Cin = x.shape
    Cout, Cin_w, kh, kw = weight.shape
    assert groups == 1 and Cin_w == Cin, "groups=1 only"
    # TODO(synk): depthwise (groups > 1) path of MobileNetV1 is not implemented.

    Ho = (H + 2 * padding - dilation * (kh - 1) - 1) // stride + 1
    Wo = (W + 2 * padding - dilation * (kw - 1) - 1) // stride + 1
    M = N * Ho * Wo
    K = Cin * kh * kw

    # ---- lane / sublane friendly sizes ----
    Coutp = _round_up(Cout, 128)                 # lane-dense output channels
    tk_max = max(128, _round_up(tk_max, 128))
    if K > tk_max:
        tk = tk_max
        Kp = _round_up(K, tk)
    elif kh == 1 and kw == 1:
        tk = Kp = K                              # pointwise: no K padding at all
    else:
        tk = Kp = _round_up(K, 16)               # bf16 sublane packing
    n_k = Kp // tk

    x_bf = x.astype(jnp.bfloat16)                # bf16 before any patch building

    if kh == 1 and kw == 1 and stride == 1 and padding == 0 and Kp == K:
        # 1x1 conv: the shifted-window decomposition degenerates to a plain
        # matmul on the activation itself -- no im2col materialisation at all.
        patches = x_bf.reshape(M, K)
    else:
        # TODO(synk): replace with in-kernel shifted-window accumulation (no
        # patch materialisation for 3x3) once Element-offset BlockSpecs are
        # validated; until then the patch buffer is built once in bf16 with
        # the K zero-padding folded into the concatenation.
        patches = _im2col_nhwc_bf16(x_bf, kh, kw, stride, padding, dilation,
                                    Ho, Wo, Kp - K)

    # Weight -> (Kp, Coutp) bf16, K-order (ki, kj, ci) matching the patches.
    w2 = jnp.transpose(weight, (2, 3, 1, 0)).reshape(K, Cout).astype(jnp.bfloat16)
    if (Kp, Coutp) != (K, Cout):
        w2 = jnp.pad(w2, ((0, Kp - K), (0, Coutp - Cout)))

    # M tiling: partial trailing tile allowed (rows masked in the statistics).
    tm = max(16, min(tm, _round_up(M, 16)))
    n_m = pl.cdiv(M, tm)

    if n_k == 1:
        kernel = functools.partial(_conv_stats_kernel_nk1, tile_m=tm, valid_m=M)
        scratch = []
    else:
        kernel = functools.partial(_conv_stats_kernel, tile_m=tm, valid_m=M)
        scratch = [pltpu.VMEM((tm, Coutp), jnp.float32)]

    if n_m * n_k >= 3:   # deep enough grid -> triple-buffer the streaming input
        patches_spec = pl.BlockSpec((tm, tk), lambda i, k: (i, k),
                                    pipeline_mode=pl.Buffered(3))
    else:
        patches_spec = pl.BlockSpec((tm, tk), lambda i, k: (i, k))

    # --- conv as a tiled bf16 MXU matmul with fused BN batch statistics ---
    y2d, s_part, ss_part = pl.pallas_call(
        kernel,
        out_shape=(
            jax.ShapeDtypeStruct((M, Coutp), jnp.bfloat16),       # bf16 y
            jax.ShapeDtypeStruct((n_m * 8, Coutp), jnp.float32),  # per-tile sum
            jax.ShapeDtypeStruct((n_m * 8, Coutp), jnp.float32),  # per-tile sumsq
        ),
        grid_spec=pltpu.PrefetchScalarGridSpec(
            num_scalar_prefetch=0,
            grid=(n_m, n_k),
            in_specs=[
                patches_spec,
                pl.BlockSpec((tk, Coutp), lambda i, k: (k, 0)),
            ],
            out_specs=[
                pl.BlockSpec((tm, Coutp), lambda i, k: (i, 0)),
                pl.BlockSpec((8, Coutp), lambda i, k: (i, 0)),
                pl.BlockSpec((8, Coutp), lambda i, k: (i, 0)),
            ],
            scratch_shapes=scratch,
        ),
        compiler_params=pltpu.CompilerParams(
            dimension_semantics=("parallel", "arbitrary"),
            vmem_limit_bytes=_VMEM_LIMIT_BYTES),
    )(patches, w2)

    # BatchNorm2d training-mode batch stats from the fused partial reductions
    # (one representative sublane per M tile; masked rows contributed zero).
    sums = s_part[::8].sum(axis=0)               # (Coutp,)
    sumsq = ss_part[::8].sum(axis=0)             # (Coutp,)
    mean = sums / M
    # TODO(synk): E[y^2]-mean^2 can cancel for large-mean activations; switch
    # to a per-tile-centred combine if parity tolerance tightens.
    var = jnp.maximum(sumsq / M - mean * mean, 0.0)   # biased variance
    inv_std = lax.rsqrt(var + eps)
    gamma_p = jnp.pad(gamma.astype(jnp.float32), (0, Coutp - Cout))
    beta_p = jnp.pad(beta.astype(jnp.float32), (0, Coutp - Cout))
    scale = (gamma_p * inv_std).reshape(1, Coutp)
    shift = (beta_p - mean * gamma_p * inv_std).reshape(1, Coutp)

    # --- fused BN(affine) + ReLU on lane-dense tiles (reads bf16 y) ---
    out2d = pl.pallas_call(
        _bn_relu_kernel,
        out_shape=jax.ShapeDtypeStruct((M, Coutp), jnp.float32),
        grid_spec=pltpu.PrefetchScalarGridSpec(
            num_scalar_prefetch=0,
            grid=(n_m,),
            in_specs=[pl.BlockSpec((tm, Coutp), lambda i: (i, 0)),
                      pl.BlockSpec((1, Coutp), lambda i: (0, 0)),
                      pl.BlockSpec((1, Coutp), lambda i: (0, 0))],
            out_specs=pl.BlockSpec((tm, Coutp), lambda i: (i, 0)),
        ),
        compiler_params=pltpu.CompilerParams(
            dimension_semantics=("parallel",),
            vmem_limit_bytes=_VMEM_LIMIT_BYTES),
    )(y2d, scale, shift)

    return out2d[:, :Cout].reshape(N, Ho, Wo, Cout)      # NHWC, no transpose


# ---------------- NCHW adapter (PyTorch-module parity) ----------------

def conv_bn_relu(x_nchw, weight, gamma, beta, **kwargs):
    """NCHW wrapper matching the PyTorch module's layout.

    The two transposes here are boundary adapters only; inside a network call
    `conv_bn_relu_nhwc` directly and stay NHWC end-to-end (saves one full HBM
    read+write of the activation per layer on each side).
    """
    x_nhwc = jnp.transpose(x_nchw, (0, 2, 3, 1))
    out = conv_bn_relu_nhwc(x_nhwc, weight, gamma, beta, **kwargs)
    return jnp.transpose(out, (0, 3, 1, 2))


# ---------------- pure-JAX reference for verification ----------------

def conv_bn_relu_ref(x, weight, gamma, beta, *, stride=1, padding=0,
                     dilation=1, eps=1e-5):
    y = lax.conv_general_dilated(
        x, weight,
        window_strides=(stride, stride),
        padding=((padding, padding), (padding, padding)),
        rhs_dilation=(dilation, dilation),
        dimension_numbers=("NCHW", "OIHW", "NCHW"))
    mean = jnp.mean(y, axis=(0, 2, 3), keepdims=True)
    var = jnp.mean((y - mean) ** 2, axis=(0, 2, 3), keepdims=True)
    yn = (y - mean) * lax.rsqrt(var + eps)
    yn = yn * gamma.reshape(1, -1, 1, 1) + beta.reshape(1, -1, 1, 1)
    return jnp.maximum(yn, 0.0)


if __name__ == "__main__":
    key = jax.random.PRNGKey(0)
    kx, kw_, kg, kb = jax.random.split(key, 4)

    N, Cin, H, W, Cout = 2, 4, 16, 16, 8
    x = jax.random.normal(kx, (N, Cin, H, W), dtype=jnp.float32)
    gamma = 1.0 + 0.1 * jax.random.normal(kg, (Cout,), dtype=jnp.float32)
    beta = 0.1 * jax.random.normal(kb, (Cout,), dtype=jnp.float32)

    def check_nchw(ksz, stride, padding):
        w = 0.1 * jax.random.normal(kw_, (Cout, Cin, ksz, ksz), dtype=jnp.float32)
        fwd = jax.jit(functools.partial(conv_bn_relu, stride=stride,
                                        padding=padding))
        out = jax.block_until_ready(fwd(x, w, gamma, beta))
        Ho = (H + 2 * padding - (ksz - 1) - 1) // stride + 1
        assert out.shape == (N, Cout, Ho, Ho), out.shape
        # Primary: reference with the same bf16 quantisation of the matmul
        # inputs (bf16 products are exact in f32 -> isolates only input rounding).
        xq = x.astype(jnp.bfloat16).astype(jnp.float32)
        wq = w.astype(jnp.bfloat16).astype(jnp.float32)
        ref_q = conv_bn_relu_ref(xq, wq, gamma, beta, stride=stride,
                                 padding=padding)
        assert jnp.allclose(out, ref_q, atol=3e-3, rtol=3e-3), \
            (ksz, stride, float(jnp.max(jnp.abs(out - ref_q))))
        # Loose sanity check vs the pure-f32 forward.
        ref = conv_bn_relu_ref(x, w, gamma, beta, stride=stride, padding=padding)
        assert jnp.allclose(out, ref, atol=5e-2, rtol=5e-2), \
            (ksz, stride, float(jnp.max(jnp.abs(out - ref))))

    # 1) 3x3 stride-1 pad-1 (general bf16 im2col path)
    check_nchw(3, 1, 1)
    # 2) 3x3 stride-2 pad-1 (MobileNetV1 stem shape)
    check_nchw(3, 2, 1)

    # 3) NHWC end-to-end entry point (no layout transposes), 1x1 fast path
    #    (no im2col), multi-M-tile grid exercising the Buffered(3) pipeline.
    x_nhwc = jnp.transpose(x, (0, 2, 3, 1))
    w1 = 0.1 * jax.random.normal(kw_, (Cout, Cin, 1, 1), dtype=jnp.float32)
    fwd_nhwc = jax.jit(functools.partial(conv_bn_relu_nhwc, stride=1,
                                         padding=0, tm=128))
    out_nhwc = jax.block_until_ready(fwd_nhwc(x_nhwc, w1, gamma, beta))
    assert out_nhwc.shape == (N, H, W, Cout), out_nhwc.shape
    xq = x.astype(jnp.bfloat16).astype(jnp.float32)
    w1q = w1.astype(jnp.bfloat16).astype(jnp.float32)
    ref1 = conv_bn_relu_ref(xq, w1q, gamma, beta, stride=1, padding=0)
    assert jnp.allclose(jnp.transpose(out_nhwc, (0, 3, 1, 2)), ref1,
                        atol=3e-3, rtol=3e-3), \
        float(jnp.max(jnp.abs(jnp.transpose(out_nhwc, (0, 3, 1, 2)) - ref1)))

    # 4) Wide 1x1 with tk_max=128 to exercise the multi-K accumulate kernel
    #    (pl.when-initialised f32 scratch, trailing 'arbitrary' K axis).
    Cin2 = 256
    x2 = jax.random.normal(kx, (N, Cin2, H, W), dtype=jnp.float32)
    w2_ = 0.05 * jax.random.normal(kw_, (Cout, Cin2, 1, 1), dtype=jnp.float32)
    fwd2 = jax.jit(functools.partial(conv_bn_relu, stride=1, padding=0,
                                     tk_max=128))
    out2 = jax.block_until_ready(fwd2(x2, w2_, gamma, beta))
    assert out2.shape == (N, Cout, H, W), out2.shape
    x2q = x2.astype(jnp.bfloat16).astype(jnp.float32)
    w2q = w2_.astype(jnp.bfloat16).astype(jnp.float32)
    ref2 = conv_bn_relu_ref(x2q, w2q, gamma, beta, stride=1, padding=0)
    assert jnp.allclose(out2, ref2, atol=3e-3, rtol=3e-3), \
        float(jnp.max(jnp.abs(out2 - ref2)))

    print("KERNEL_OK")
</pallas_src>

<mosaic_0001>
module attributes {stable_mosaic.version = 11 : i64} {
  func.func @_conv_stats_kernel_nk1(%arg0: i32, %arg1: i32, %arg2: memref<512x48xbf16, #tpu.memory_space<vmem>>, %arg3: memref<48x128xbf16, #tpu.memory_space<vmem>>, %arg4: memref<512x128xbf16, #tpu.memory_space<vmem>>, %arg5: memref<8x128xf32, #tpu.memory_space<vmem>>, %arg6: memref<8x128xf32, #tpu.memory_space<vmem>>) attributes {dimension_semantics = [#tpu.dimension_semantics<parallel>, #tpu.dimension_semantics<arbitrary>], iteration_bounds = array<i64: 1, 1>, scalar_prefetch = 0 : i64, scratch_operands = 0 : i64, tpu.core_type = #tpu.core_type<tc>, window_params = [{transform_indices = @transform_0, window_bounds = array<i64: 512, 48>}, {transform_indices = @transform_1, window_bounds = array<i64: 48, 128>}, {transform_indices = @transform_2, window_bounds = array<i64: 512, 128>}, {transform_indices = @transform_3, window_bounds = array<i64: 8, 128>}, {transform_indices = @transform_4, window_bounds = array<i64: 8, 128>}]} {
    %c0 = arith.constant 0 : index
    %c0_0 = arith.constant 0 : index
    %0 = vector.load %arg2[%c0, %c0_0] : memref<512x48xbf16, #tpu.memory_space<vmem>>, vector<512x48xbf16>
    %c0_1 = arith.constant 0 : index
    %c0_2 = arith.constant 0 : index
    %1 = vector.load %arg3[%c0_1, %c0_2] : memref<48x128xbf16, #tpu.memory_space<vmem>>, vector<48x128xbf16>
    %cst = arith.constant dense<0.000000e+00> : vector<512x128xf32>
    %2 = tpu.matmul %0, %1, %cst {dimension_numbers = #tpu.dot_dimension_numbers<[1], [0], [0], [1], [0, 0, 1, 1], [], []>} : vector<512x48xbf16>, vector<48x128xbf16>, vector<512x128xf32> -> vector<512x128xf32>
    %3 = arith.truncf %2 : vector<512x128xf32> to vector<512x128xbf16>
    %c0_3 = arith.constant 0 : index
    %c0_4 = arith.constant 0 : index
    %4 = vector.load %arg4[%c0_3, %c0_4] : memref<512x128xbf16, #tpu.memory_space<vmem>>, vector<512x128xbf16>
    tpu.vector_store %arg4[%c0_3, %c0_4], %3 {strides = array<i32>} : memref<512x128xbf16, #tpu.memory_space<vmem>>, vector<512x128xbf16>,
    %cst_5 = arith.constant dense<0.000000e+00> : vector<128xf32>
    %5 = vector.multi_reduction <add>, %2, %cst_5 [0] : vector<512x128xf32> to vector<128xf32>
    %6 = vector.shape_cast %5 : vector<128xf32> to vector<1x128xf32>
    %7 = arith.mulf %2, %2 : vector<512x128xf32>
    %cst_6 = arith.constant dense<0.000000e+00> : vector<128xf32>
    %8 = vector.multi_reduction <add>, %7, %cst_6 [0] : vector<512x128xf32> to vector<128xf32>
    %9 = vector.shape_cast %8 : vector<128xf32> to vector<1x128xf32>
    %10 = vector.shape_cast %6 : vector<1x128xf32> to vector<1x128xf32>
    %11 = vector.broadcast %10 : vector<1x128xf32> to vector<8x128xf32>
    %c0_7 = arith.constant 0 : index
    %c0_8 = arith.constant 0 : index
    %12 = vector.load %arg5[%c0_7, %c0_8] : memref<8x128xf32, #tpu.memory_space<vmem>>, vector<8x128xf32>
    tpu.vector_store %arg5[%c0_7, %c0_8], %11 {strides = array<i32>} : memref<8x128xf32, #tpu.memory_space<vmem>>, vector<8x128xf32>,
    %13 = vector.shape_cast %9 : vector<1x128xf32> to vector<1x128xf32>
    %14 = vector.broadcast %13 : vector<1x128xf32> to vector<8x128xf32>
    %c0_9 = arith.constant 0 : index
    %c0_10 = arith.constant 0 : index
    %15 = vector.load %arg6[%c0_9, %c0_10] : memref<8x128xf32, #tpu.memory_space<vmem>>, vector<8x128xf32>
    tpu.vector_store %arg6[%c0_9, %c0_10], %14 {strides = array<i32>} : memref<8x128xf32, #tpu.memory_space<vmem>>, vector<8x128xf32>,
    return
  }
  func.func @transform_0(%arg0: i32, %arg1: i32) -> (i32, i32) {
    %c0_i32 = arith.constant 0 : i32
    return %arg0, %arg1 : i32, i32
  }
  func.func @transform_1(%arg0: i32, %arg1: i32) -> (i32, i32) {
    %c0_i32 = arith.constant 0 : i32
    %c0_i32_0 = arith.constant 0 : i32
    return %arg1, %c0_i32 : i32, i32
  }
  func.func @transform_2(%arg0: i32, %arg1: i32) -> (i32, i32) {
    %c0_i32 = arith.constant 0 : i32
    %c0_i32_0 = arith.constant 0 : i32
    return %arg0, %c0_i32 : i32, i32
  }
  func.func @transform_3(%arg0: i32, %arg1: i32) -> (i32, i32) {
    %c0_i32 = arith.constant 0 : i32
    %c0_i32_0 = arith.constant 0 : i32
    return %arg0, %c0_i32 : i32, i32
  }
  func.func @transform_4(%arg0: i32, %arg1: i32) -> (i32, i32) {
    %c0_i32 = arith.constant 0 : i32
    %c0_i32_0 = arith.constant 0 : i32
    return %arg0, %c0_i32 : i32, i32
  }
}

module attributes {stable_mosaic.version = 11 : i64} {
  func.func @_bn_relu_kernel(%arg0: i32, %arg1: memref<512x128xbf16, #tpu.memory_space<vmem>>, %arg2: memref<1x128xf32, #tpu.memory_space<vmem>>, %arg3: memref<1x128xf32, #tpu.memory_space<vmem>>, %arg4: memref<512x128xf32, #tpu.memory_space<vmem>>) attributes {dimension_semantics = [#tpu.dimension_semantics<parallel>], iteration_bounds = array<i64: 1>, scalar_prefetch = 0 : i64, scratch_operands = 0 : i64, tpu.core_type = #tpu.core_type<tc>, window_params = [{transform_indices = @transform_0, window_bounds = array<i64: 512, 128>}, {pipeline_mode = #tpu.pipeline_mode<synchronous>, transform_indices = @transform_1, window_bounds = array<i64: 1, 128>}, {pipeline_mode = #tpu.pipeline_mode<synchronous>, transform_indices = @transform_2, window_bounds = array<i64: 1, 128>}, {transform_indices = @transform_3, window_bounds = array<i64: 512, 128>}]} {
    %c0 = arith.constant 0 : index
    %c0_0 = arith.constant 0 : index
    %0 = vector.load %arg1[%c0, %c0_0] : memref<512x128xbf16, #tpu.memory_space<vmem>>, vector<512x128xbf16>
    %1 = arith.extf %0 : vector<512x128xbf16> to vector<512x128xf32>
    %c0_1 = arith.constant 0 : index
    %c0_2 = arith.constant 0 : index
    %2 = vector.load %arg2[%c0_1, %c0_2] : memref<1x128xf32, #tpu.memory_space<vmem>>, vector<1x128xf32>
    %3 = vector.broadcast %2 : vector<1x128xf32> to vector<512x128xf32>
    %4 = arith.mulf %1, %3 : vector<512x128xf32>
    %c0_3 = arith.constant 0 : index
    %c0_4 = arith.constant 0 : index
    %5 = vector.load %arg3[%c0_3, %c0_4] : memref<1x128xf32, #tpu.memory_space<vmem>>, vector<1x128xf32>
    %6 = vector.broadcast %5 : vector<1x128xf32> to vector<512x128xf32>
    %7 = arith.addf %4, %6 : vector<512x128xf32>
    %cst = arith.constant 0.000000e+00 : f32
    %8 = vector.broadcast %cst : f32 to vector<512x128xf32>
    %9 = arith.maximumf %7, %8 : vector<512x128xf32>
    %c0_5 = arith.constant 0 : index
    %c0_6 = arith.constant 0 : index
    %10 = vector.load %arg4[%c0_5, %c0_6] : memref<512x128xf32, #tpu.memory_space<vmem>>, vector<512x128xf32>
    tpu.vector_store %arg4[%c0_5, %c0_6], %9 {strides = array<i32>} : memref<512x128xf32, #tpu.memory_space<vmem>>, vector<512x128xf32>,
    return
  }
  func.func @transform_0(%arg0: i32) -> (i32, i32) {
    %c0_i32 = arith.constant 0 : i32
    %c0_i32_0 = arith.constant 0 : i32
    return %arg0, %c0_i32 : i32, i32
  }
  func.func @transform_1(%arg0: i32) -> (i32, i32) {
    %c0_i32 = arith.constant 0 : i32
    %c0_i32_0 = arith.constant 0 : i32
    %c0_i32_1 = arith.constant 0 : i32
    return %c0_i32, %c0_i32_0 : i32, i32
  }
  func.func @transform_2(%arg0: i32) -> (i32, i32) {
    %c0_i32 = arith.constant 0 : i32
    %c0_i32_0 = arith.constant 0 : i32
    %c0_i32_1 = arith.constant 0 : i32
    return %c0_i32, %c0_i32_0 : i32, i32
  }
  func.func @transform_3(%arg0: i32) -> (i32, i32) {
    %c0_i32 = arith.constant 0 : i32
    %c0_i32_0 = arith.constant 0 : i32
    return %arg0, %c0_i32 : i32, i32
  }
}

</mosaic_0001>

<bundles_post_ra>
// kernel: conv_bn_relu.3
= control target key start
LH: loop header
LB: loop body
LE: loop exit
PB: predicated region body
PF: predicated region fallthrough
CT: control target
= control target key end

     0   :  { %s1023_s0 = inlined_call_operand.vmem [shape: bf16[512,128], index: 0, kind: input, shape index: {}]   ;;  %s1024_s1 = inlined_call_operand.vmem [shape: f32[1,128], index: 1, kind: input, shape index: {}]   ;;  %s1025_s2 = inlined_call_operand.vmem [shape: f32[1,128], index: 2, kind: input, shape index: {}]   ;;  %s1026_s3 = inlined_call_operand.vmem [shape: f32[512,128], index: 3, kind: output, shape index: {}]  }
   0x1   :  { %v419_v0 = vld [vmem:[%s1023_s0] sm:$0xff]   ;;  %v546_v4 = vld [vmem:[%s1023_s0 + $0x8] sm:$0xff]   ;;  %v547_v5 = vld [vmem:[%s1023_s0 + $0x10] sm:$0xff]  }
   0x2   :  { %v603_v1 = vld [vmem:[%s1024_s1] ss:$0 sm:$0xff]  ;;  %v420_v2 = vunpack.c.l.bf16 %v419_v0  ;;  %v421_v3 = vunpack.c.h.bf16 %v419_v0  ;;  %v548_v6 = vld [vmem:[%s1023_s0 + $0x18] sm:$0xff]   ;;  %v424_v8 = vunpack.c.l.bf16 %v546_v4  ;;  %v425_v9 = vunpack.c.h.bf16 %v546_v4  ;;  %v550_v33 = vld [vmem:[%s1023_s0 + $0x28] sm:$0xff]  }
   0x3   :  { %v617_v7 = vld [vmem:[%s1025_s2] ss:$0 sm:$0xff]  ;;  %v428_v10 = vunpack.c.l.bf16 %v547_v5  ;;  %v429_v11 = vunpack.c.h.bf16 %v547_v5  ;;  %v432_v14 = vunpack.c.l.bf16 %v548_v6  ;;  %v433_v15 = vunpack.c.h.bf16 %v548_v6  ;;  %v551_v34 = vld [vmem:[%s1023_s0 + $0x30] sm:$0xff]   ;;  %v552_v39 = vld [vmem:[%s1023_s0 + $0x38] sm:$0xff]  }
   0x4   :  { %v149_v12 = vmul.f32 %v420_v2, %v603_v1  ;;  %v150_v13 = vmul.f32 %v421_v3, %v603_v1  ;;  %v151_v16 = vmul.f32 %v424_v8, %v603_v1  ;;  %v152_v17 = vmul.f32 %v425_v9, %v603_v1  ;;  %v549_v28 = vld [vmem:[%s1023_s0 + $0x20] sm:$0xff]   ;;  %v554_v6 = vld [vmem:[%s1023_s0 + $0x48] sm:$0xff]   ;;  %v555_v8 = vld [vmem:[%s1023_s0 + $0x50] sm:$0xff]  }
   0x5   :  { %v153_v18 = vmul.f32 %v428_v10, %v603_v1  ;;  %v154_v19 = vmul.f32 %v429_v11, %v603_v1  ;;  %v155_v22 = vmul.f32 %v432_v14, %v603_v1  ;;  %v156_v23 = vmul.f32 %v433_v15, %v603_v1  ;;  %v553_v0 = vld [vmem:[%s1023_s0 + $0x40] sm:$0xff]  }
   0x6   :  { %v220_v20 = vadd.f32 %v617_v7, %v149_v12  ;;  %v221_v21 = vadd.f32 %v617_v7, %v150_v13  ;;  %v222_v24 = vadd.f32 %v617_v7, %v151_v16  ;;  %v223_v25 = vadd.f32 %v617_v7, %v152_v17  ;;  %v556_v13 = vld [vmem:[%s1023_s0 + $0x58] sm:$0xff]  }
   0x7   :  { %v224_v26 = vadd.f32 %v617_v7, %v153_v18  ;;  %v225_v27 = vadd.f32 %v617_v7, %v154_v19  ;;  %v226_v31 = vadd.f32 %v617_v7, %v155_v22  ;;  %v227_v32 = vadd.f32 %v617_v7, %v156_v23 }
   0x8   :  { %v284_v29 = vmax.f32 %v220_v20, 0.0  ;;  %v285_v30 = vmax.f32 %v221_v21, 0.0  ;;  %v286_v35 = vmax.f32 %v222_v24, 0.0  ;;  %v287_v36 = vmax.f32 %v223_v25, 0.0 }
   0x9   :  { %v288_v37 = vmax.f32 %v224_v26, 0.0  ;;  %v289_v38 = vmax.f32 %v225_v27, 0.0  ;;  %v290_v40 = vmax.f32 %v226_v31, 0.0  ;;  %v291_v41 = vmax.f32 %v227_v32, 0.0 }
   0xa   :  { %348 = vst [vmem:[%s1026_s3] sm:$0xff] %v284_v29  ;;  %349 = vst [vmem:[%s1026_s3 + $0x8] sm:$0xff] %v285_v30  ;;  %v436_v42 = vunpack.c.l.bf16 %v549_v28  ;;  %v437_v43 = vunpack.c.h.bf16 %v549_v28  ;;  %v440_v44 = vunpack.c.l.bf16 %v550_v33  ;;  %v441_v45 = vunpack.c.h.bf16 %v550_v33 }
   0xb   :  { %350 = vst [vmem:[%s1026_s3 + $0x10] sm:$0xff] %v286_v35  ;;  %351 = vst [vmem:[%s1026_s3 + $0x18] sm:$0xff] %v287_v36  ;;  %v444_v46 = vunpack.c.l.bf16 %v551_v34  ;;  %v445_v47 = vunpack.c.h.bf16 %v551_v34  ;;  %v448_v50 = vunpack.c.l.bf16 %v552_v39  ;;  %v449_v51 = vunpack.c.h.bf16 %v552_v39 }
   0xc   :  { %352 = vst [vmem:[%s1026_s3 + $0x20] sm:$0xff] %v288_v37  ;;  %353 = vst [vmem:[%s1026_s3 + $0x28] sm:$0xff] %v289_v38  ;;  %v157_v48 = vmul.f32 %v436_v42, %v603_v1  ;;  %v158_v49 = vmul.f32 %v437_v43, %v603_v1  ;;  %v159_v52 = vmul.f32 %v440_v44, %v603_v1  ;;  %v452_v16 = vunpack.c.l.bf16 %v553_v0  ;;  %v557_v38 = vld [vmem:[%s1023_s0 + $0x60] sm:$0xff]   ;;  %v558_v43 = vld [vmem:[%s1023_s0 + $0x68] sm:$0xff]  }
   0xd   :  { %354 = vst [vmem:[%s1026_s3 + $0x30] sm:$0xff] %v290_v40  ;;  %355 = vst [vmem:[%s1026_s3 + $0x38] sm:$0xff] %v291_v41  ;;  %v160_v53 = vmul.f32 %v441_v45, %v603_v1  ;;  %v161_v54 = vmul.f32 %v444_v46, %v603_v1  ;;  %v162_v55 = vmul.f32 %v445_v47, %v603_v1  ;;  %v453_v17 = vunpack.c.h.bf16 %v553_v0  ;;  %v559_v44 = vld [vmem:[%s1023_s0 + $0x70] sm:$0xff]  }
   0xe   :  { %v228_v56 = vadd.f32 %v617_v7, %v157_v48  ;;  %v229_v57 = vadd.f32 %v617_v7, %v158_v49  ;;  %v163_v58 = vmul.f32 %v448_v50, %v603_v1  ;;  %v164_v59 = vmul.f32 %v449_v51, %v603_v1  ;;  %v560_v49 = vld [vmem:[%s1023_s0 + $0x78] sm:$0xff]  }
   0xf   :  { %v230_v60 = vadd.f32 %v617_v7, %v159_v52  ;;  %v231_v61 = vadd.f32 %v617_v7, %v160_v53  ;;  %v232_v62 = vadd.f32 %v617_v7, %v161_v54  ;;  %v233_v63 = vadd.f32 %v617_v7, %v162_v55 }
  0x10   :  { %v292_v2 = vmax.f32 %v228_v56, 0.0  ;;  %v293_v3 = vmax.f32 %v229_v57, 0.0  ;;  %v234_v4 = vadd.f32 %v617_v7, %v163_v58  ;;  %v235_v5 = vadd.f32 %v617_v7, %v164_v59 }
  0x11   :  { %v294_v9 = vmax.f32 %v230_v60, 0.0  ;;  %v295_v10 = vmax.f32 %v231_v61, 0.0  ;;  %v296_v11 = vmax.f32 %v232_v62, 0.0  ;;  %v297_v12 = vmax.f32 %v233_v63, 0.0 }
  0x12   :  { %356 = vst [vmem:[%s1026_s3 + $0x40] sm:$0xff] %v292_v2  ;;  %357 = vst [vmem:[%s1026_s3 + $0x48] sm:$0xff] %v293_v3  ;;  %v298_v14 = vmax.f32 %v234_v4, 0.0  ;;  %v299_v15 = vmax.f32 %v235_v5, 0.0  ;;  %v456_v18 = vunpack.c.l.bf16 %v554_v6  ;;  %v457_v19 = vunpack.c.h.bf16 %v554_v6 }
  0x13   :  { %358 = vst [vmem:[%s1026_s3 + $0x50] sm:$0xff] %v294_v9  ;;  %359 = vst [vmem:[%s1026_s3 + $0x58] sm:$0xff] %v295_v10  ;;  %v460_v20 = vunpack.c.l.bf16 %v555_v8  ;;  %v461_v21 = vunpack.c.h.bf16 %v555_v8  ;;  %v165_v22 = vmul.f32 %v452_v16, %v603_v1  ;;  %v166_v23 = vmul.f32 %v453_v17, %v603_v1  ;;  %v562_v17 = vld [vmem:[%s1023_s0 + $0x88] sm:$0xff]  }
  0x14   :  { %360 = vst [vmem:[%s1026_s3 + $0x60] sm:$0xff] %v296_v11  ;;  %361 = vst [vmem:[%s1026_s3 + $0x68] sm:$0xff] %v297_v12  ;;  %v464_v24 = vunpack.c.l.bf16 %v556_v13  ;;  %v465_v25 = vunpack.c.h.bf16 %v556_v13  ;;  %v167_v26 = vmul.f32 %v456_v18, %v603_v1  ;;  %v168_v27 = vmul.f32 %v457_v19, %v603_v1  ;;  %v561_v12 = vld [vmem:[%s1023_s0 + $0x80] sm:$0xff]   ;;  %v563_v18 = vld [vmem:[%s1023_s0 + $0x90] sm:$0xff]  }
  0x15   :  { %362 = vst [vmem:[%s1026_s3 + $0x70] sm:$0xff] %v298_v14  ;;  %363 = vst [vmem:[%s1026_s3 + $0x78] sm:$0xff] %v299_v15  ;;  %v169_v28 = vmul.f32 %v460_v20, %v603_v1  ;;  %v170_v29 = vmul.f32 %v461_v21, %v603_v1  ;;  %v236_v30 = vadd.f32 %v617_v7, %v165_v22  ;;  %v468_v52 = vunpack.c.l.bf16 %v557_v38 }
  0x16   :  { %v237_v31 = vadd.f32 %v617_v7, %v166_v23  ;;  %v171_v32 = vmul.f32 %v464_v24, %v603_v1  ;;  %v172_v33 = vmul.f32 %v465_v25, %v603_v1  ;;  %v238_v34 = vadd.f32 %v617_v7, %v167_v26  ;;  %v564_v23 = vld [vmem:[%s1023_s0 + $0x98] sm:$0xff]  }
  0x17   :  { %v239_v35 = vadd.f32 %v617_v7, %v168_v27  ;;  %v240_v36 = vadd.f32 %v617_v7, %v169_v28  ;;  %v241_v37 = vadd.f32 %v617_v7, %v170_v29  ;;  %v300_v39 = vmax.f32 %v236_v30, 0.0 }
  0x18   :  { %v301_v40 = vmax.f32 %v237_v31, 0.0  ;;  %v242_v41 = vadd.f32 %v617_v7, %v171_v32  ;;  %v243_v42 = vadd.f32 %v617_v7, %v172_v33  ;;  %v302_v45 = vmax.f32 %v238_v34, 0.0 }
  0x19   :  { %v303_v46 = vmax.f32 %v239_v35, 0.0  ;;  %v304_v47 = vmax.f32 %v240_v36, 0.0  ;;  %v305_v48 = vmax.f32 %v241_v37, 0.0  ;;  %364 = vst [vmem:[%s1026_s3 + $0x80] sm:$0xff] %v300_v39  ;;  %v469_v53 = vunpack.c.h.bf16 %v557_v38 }
  0x1a   :  { %365 = vst [vmem:[%s1026_s3 + $0x88] sm:$0xff] %v301_v40  ;;  %v306_v50 = vmax.f32 %v242_v41, 0.0  ;;  %v307_v51 = vmax.f32 %v243_v42, 0.0  ;;  %366 = vst [vmem:[%s1026_s3 + $0x90] sm:$0xff] %v302_v45  ;;  %v472_v54 = vunpack.c.l.bf16 %v558_v43  ;;  %v473_v55 = vunpack.c.h.bf16 %v558_v43 }
  0x1b   :  { %367 = vst [vmem:[%s1026_s3 + $0x98] sm:$0xff] %v303_v46  ;;  %368 = vst [vmem:[%s1026_s3 + $0xa0] sm:$0xff] %v304_v47  ;;  %v476_v56 = vunpack.c.l.bf16 %v559_v44  ;;  %v477_v57 = vunpack.c.h.bf16 %v559_v44  ;;  %v173_v58 = vmul.f32 %v468_v52, %v603_v1  ;;  %v174_v59 = vmul.f32 %v469_v53, %v603_v1  ;;  %v566_v53 = vld [vmem:[%s1023_s0 + $0xa8] sm:$0xff]  }
  0x1c   :  { %369 = vst [vmem:[%s1026_s3 + $0xa8] sm:$0xff] %v305_v48  ;;  %370 = vst [vmem:[%s1026_s3 + $0xb0] sm:$0xff] %v306_v50  ;;  %v480_v60 = vunpack.c.l.bf16 %v560_v49  ;;  %v481_v61 = vunpack.c.h.bf16 %v560_v49  ;;  %v175_v62 = vmul.f32 %v472_v54, %v603_v1  ;;  %v176_v63 = vmul.f32 %v473_v55, %v603_v1  ;;  %v565_v48 = vld [vmem:[%s1023_s0 + $0xa0] sm:$0xff]   ;;  %v567_v54 = vld [vmem:[%s1023_s0 + $0xb0] sm:$0xff]  }
  0x1d   :  { %371 = vst [vmem:[%s1026_s3 + $0xb8] sm:$0xff] %v307_v51  ;;  %v177_v0 = vmul.f32 %v476_v56, %v603_v1  ;;  %v178_v2 = vmul.f32 %v477_v57, %v603_v1  ;;  %v244_v3 = vadd.f32 %v617_v7, %v173_v58  ;;  %v245_v4 = vadd.f32 %v617_v7, %v174_v59  ;;  %v568_v59 = vld [vmem:[%s1023_s0 + $0xb8] sm:$0xff]  }
  0x1e   :  { %v179_v5 = vmul.f32 %v480_v60, %v603_v1  ;;  %v180_v6 = vmul.f32 %v481_v61, %v603_v1  ;;  %v246_v8 = vadd.f32 %v617_v7, %v175_v62  ;;  %v247_v9 = vadd.f32 %v617_v7, %v176_v63 }
  0x1f   :  { %v248_v10 = vadd.f32 %v617_v7, %v177_v0  ;;  %v249_v11 = vadd.f32 %v617_v7, %v178_v2  ;;  %v308_v13 = vmax.f32 %v244_v3, 0.0  ;;  %v309_v14 = vmax.f32 %v245_v4, 0.0 }
  0x20   :  { %v250_v15 = vadd.f32 %v617_v7, %v179_v5  ;;  %v251_v16 = vadd.f32 %v617_v7, %v180_v6  ;;  %v310_v19 = vmax.f32 %v246_v8, 0.0  ;;  %v311_v20 = vmax.f32 %v247_v9, 0.0 }
  0x21   :  { %v312_v21 = vmax.f32 %v248_v10, 0.0  ;;  %v313_v22 = vmax.f32 %v249_v11, 0.0  ;;  %372 = vst [vmem:[%s1026_s3 + $0xc0] sm:$0xff] %v308_v13  ;;  %373 = vst [vmem:[%s1026_s3 + $0xc8] sm:$0xff] %v309_v14  ;;  %v484_v26 = vunpack.c.l.bf16 %v561_v12  ;;  %v485_v27 = vunpack.c.h.bf16 %v561_v12 }
  0x22   :  { %v314_v24 = vmax.f32 %v250_v15, 0.0  ;;  %v315_v25 = vmax.f32 %v251_v16, 0.0  ;;  %374 = vst [vmem:[%s1026_s3 + $0xd0] sm:$0xff] %v310_v19  ;;  %375 = vst [vmem:[%s1026_s3 + $0xd8] sm:$0xff] %v311_v20  ;;  %v488_v28 = vunpack.c.l.bf16 %v562_v17  ;;  %v489_v29 = vunpack.c.h.bf16 %v562_v17 }
  0x23   :  { %376 = vst [vmem:[%s1026_s3 + $0xe0] sm:$0xff] %v312_v21  ;;  %377 = vst [vmem:[%s1026_s3 + $0xe8] sm:$0xff] %v313_v22  ;;  %v492_v30 = vunpack.c.l.bf16 %v563_v18  ;;  %v493_v31 = vunpack.c.h.bf16 %v563_v18  ;;  %v181_v32 = vmul.f32 %v484_v26, %v603_v1  ;;  %v182_v33 = vmul.f32 %v485_v27, %v603_v1  ;;  %v569_v22 = vld [vmem:[%s1023_s0 + $0xc0] sm:$0xff]   ;;  %v570_v27 = vld [vmem:[%s1023_s0 + $0xc8] sm:$0xff]  }
  0x24   :  { %378 = vst [vmem:[%s1026_s3 + $0xf0] sm:$0xff] %v314_v24  ;;  %379 = vst [vmem:[%s1026_s3 + $0xf8] sm:$0xff] %v315_v25  ;;  %v496_v34 = vunpack.c.l.bf16 %v564_v23  ;;  %v497_v35 = vunpack.c.h.bf16 %v564_v23  ;;  %v183_v36 = vmul.f32 %v488_v28, %v603_v1  ;;  %v184_v37 = vmul.f32 %v489_v29, %v603_v1  ;;  %v571_v28 = vld [vmem:[%s1023_s0 + $0xd0] sm:$0xff]  }
  0x25   :  { %v185_v38 = vmul.f32 %v492_v30, %v603_v1  ;;  %v186_v39 = vmul.f32 %v493_v31, %v603_v1  ;;  %v252_v40 = vadd.f32 %v617_v7, %v181_v32  ;;  %v253_v41 = vadd.f32 %v617_v7, %v182_v33  ;;  %v572_v33 = vld [vmem:[%s1023_s0 + $0xd8] sm:$0xff]  }
  0x26   :  { %v187_v42 = vmul.f32 %v496_v34, %v603_v1  ;;  %v188_v43 = vmul.f32 %v497_v35, %v603_v1  ;;  %v254_v44 = vadd.f32 %v617_v7, %v183_v36  ;;  %v255_v45 = vadd.f32 %v617_v7, %v184_v37 }
  0x27   :  { %v256_v46 = vadd.f32 %v617_v7, %v185_v38  ;;  %v257_v47 = vadd.f32 %v617_v7, %v186_v39  ;;  %v316_v49 = vmax.f32 %v252_v40, 0.0  ;;  %v317_v50 = vmax.f32 %v253_v41, 0.0 }
  0x28   :  { %v258_v51 = vadd.f32 %v617_v7, %v187_v42  ;;  %v259_v52 = vadd.f32 %v617_v7, %v188_v43  ;;  %v318_v55 = vmax.f32 %v254_v44, 0.0  ;;  %v319_v56 = vmax.f32 %v255_v45, 0.0 }
  0x29   :  { %v320_v57 = vmax.f32 %v256_v46, 0.0  ;;  %v321_v58 = vmax.f32 %v257_v47, 0.0  ;;  %380 = vst [vmem:[%s1026_s3 + $0x100] sm:$0xff] %v316_v49  ;;  %381 = vst [vmem:[%s1026_s3 + $0x108] sm:$0xff] %v317_v50  ;;  %v500_v62 = vunpack.c.l.bf16 %v565_v48  ;;  %v501_v63 = vunpack.c.h.bf16 %v565_v48 }
  0x2a   :  { %v322_v60 = vmax.f32 %v258_v51, 0.0  ;;  %v323_v61 = vmax.f32 %v259_v52, 0.0  ;;  %382 = vst [vmem:[%s1026_s3 + $0x110] sm:$0xff] %v318_v55  ;;  %383 = vst [vmem:[%s1026_s3 + $0x118] sm:$0xff] %v319_v56  ;;  %v504_v0 = vunpack.c.l.bf16 %v566_v53  ;;  %v505_v2 = vunpack.c.h.bf16 %v566_v53 }
  0x2b   :  { %384 = vst [vmem:[%s1026_s3 + $0x120] sm:$0xff] %v320_v57  ;;  %385 = vst [vmem:[%s1026_s3 + $0x128] sm:$0xff] %v321_v58  ;;  %v508_v3 = vunpack.c.l.bf16 %v567_v54  ;;  %v509_v4 = vunpack.c.h.bf16 %v567_v54  ;;  %v189_v5 = vmul.f32 %v500_v62, %v603_v1  ;;  %v190_v6 = vmul.f32 %v501_v63, %v603_v1  ;;  %v573_v58 = vld [vmem:[%s1023_s0 + $0xe0] sm:$0xff]   ;;  %v574_v63 = vld [vmem:[%s1023_s0 + $0xe8] sm:$0xff]  }
  0x2c   :  { %386 = vst [vmem:[%s1026_s3 + $0x130] sm:$0xff] %v322_v60  ;;  %387 = vst [vmem:[%s1026_s3 + $0x138] sm:$0xff] %v323_v61  ;;  %v512_v8 = vunpack.c.l.bf16 %v568_v59  ;;  %v513_v9 = vunpack.c.h.bf16 %v568_v59  ;;  %v191_v10 = vmul.f32 %v504_v0, %v603_v1  ;;  %v192_v11 = vmul.f32 %v505_v2, %v603_v1  ;;  %v575_v0 = vld [vmem:[%s1023_s0 + $0xf0] sm:$0xff]  }
  0x2d   :  { %v193_v12 = vmul.f32 %v508_v3, %v603_v1  ;;  %v194_v13 = vmul.f32 %v509_v4, %v603_v1  ;;  %v260_v14 = vadd.f32 %v617_v7, %v189_v5  ;;  %v261_v15 = vadd.f32 %v617_v7, %v190_v6  ;;  %v576_v6 = vld [vmem:[%s1023_s0 + $0xf8] sm:$0xff]  }
  0x2e   :  { %v195_v16 = vmul.f32 %v512_v8, %v603_v1  ;;  %v196_v17 = vmul.f32 %v513_v9, %v603_v1  ;;  %v262_v18 = vadd.f32 %v617_v7, %v191_v10  ;;  %v263_v19 = vadd.f32 %v617_v7, %v192_v11 }
  0x2f   :  { %v264_v20 = vadd.f32 %v617_v7, %v193_v12  ;;  %v265_v21 = vadd.f32 %v617_v7, %v194_v13  ;;  %v324_v23 = vmax.f32 %v260_v14, 0.0  ;;  %v325_v24 = vmax.f32 %v261_v15, 0.0 }
  0x30   :  { %v266_v25 = vadd.f32 %v617_v7, %v195_v16  ;;  %v267_v26 = vadd.f32 %v617_v7, %v196_v17  ;;  %v326_v29 = vmax.f32 %v262_v18, 0.0  ;;  %v327_v30 = vmax.f32 %v263_v19, 0.0 }
  0x31   :  { %v328_v31 = vmax.f32 %v264_v20, 0.0  ;;  %v329_v32 = vmax.f32 %v265_v21, 0.0  ;;  %388 = vst [vmem:[%s1026_s3 + $0x140] sm:$0xff] %v324_v23  ;;  %389 = vst [vmem:[%s1026_s3 + $0x148] sm:$0xff] %v325_v24  ;;  %v516_v36 = vunpack.c.l.bf16 %v569_v22  ;;  %v517_v37 = vunpack.c.h.bf16 %v569_v22 }
  0x32   :  { %v330_v34 = vmax.f32 %v266_v25, 0.0  ;;  %v331_v35 = vmax.f32 %v267_v26, 0.0  ;;  %390 = vst [vmem:[%s1026_s3 + $0x150] sm:$0xff] %v326_v29  ;;  %391 = vst [vmem:[%s1026_s3 + $0x158] sm:$0xff] %v327_v30  ;;  %v520_v38 = vunpack.c.l.bf16 %v570_v27  ;;  %v521_v39 = vunpack.c.h.bf16 %v570_v27 }
  0x33   :  { %392 = vst [vmem:[%s1026_s3 + $0x160] sm:$0xff] %v328_v31  ;;  %393 = vst [vmem:[%s1026_s3 + $0x168] sm:$0xff] %v329_v32  ;;  %v524_v40 = vunpack.c.l.bf16 %v571_v28  ;;  %v525_v41 = vunpack.c.h.bf16 %v571_v28  ;;  %v197_v42 = vmul.f32 %v516_v36, %v603_v1  ;;  %v198_v43 = vmul.f32 %v517_v37, %v603_v1 }
  0x34   :  { %394 = vst [vmem:[%s1026_s3 + $0x170] sm:$0xff] %v330_v34  ;;  %395 = vst [vmem:[%s1026_s3 + $0x178] sm:$0xff] %v331_v35  ;;  %v528_v44 = vunpack.c.l.bf16 %v572_v33  ;;  %v529_v45 = vunpack.c.h.bf16 %v572_v33  ;;  %v199_v46 = vmul.f32 %v520_v38, %v603_v1  ;;  %v200_v47 = vmul.f32 %v521_v39, %v603_v1 }
  0x35   :  { %v201_v48 = vmul.f32 %v524_v40, %v603_v1  ;;  %v202_v49 = vmul.f32 %v525_v41, %v603_v1  ;;  %v268_v50 = vadd.f32 %v617_v7, %v197_v42  ;;  %v269_v51 = vadd.f32 %v617_v7, %v198_v43 }
  0x36   :  { %v203_v52 = vmul.f32 %v528_v44, %v603_v1  ;;  %v204_v53 = vmul.f32 %v529_v45, %v603_v1  ;;  %v270_v54 = vadd.f32 %v617_v7, %v199_v46  ;;  %v271_v55 = vadd.f32 %v617_v7, %v200_v47 }
  0x37   :  { %v272_v56 = vadd.f32 %v617_v7, %v201_v48  ;;  %v273_v57 = vadd.f32 %v617_v7, %v202_v49  ;;  %v332_v59 = vmax.f32 %v268_v50, 0.0  ;;  %v333_v60 = vmax.f32 %v269_v51, 0.0 }
  0x38   :  { %v274_v61 = vadd.f32 %v617_v7, %v203_v52  ;;  %v275_v62 = vadd.f32 %v617_v7, %v204_v53  ;;  %v334_v2 = vmax.f32 %v270_v54, 0.0  ;;  %v335_v3 = vmax.f32 %v271_v55, 0.0 }
  0x39   :  { %v336_v4 = vmax.f32 %v272_v56, 0.0  ;;  %v337_v5 = vmax.f32 %v273_v57, 0.0  ;;  %396 = vst [vmem:[%s1026_s3 + $0x180] sm:$0xff] %v332_v59  ;;  %397 = vst [vmem:[%s1026_s3 + $0x188] sm:$0xff] %v333_v60  ;;  %v532_v10 = vunpack.c.l.bf16 %v573_v58  ;;  %v533_v11 = vunpack.c.h.bf16 %v573_v58 }
  0x3a   :  { %v338_v8 = vmax.f32 %v274_v61, 0.0  ;;  %v339_v9 = vmax.f32 %v275_v62, 0.0  ;;  %398 = vst [vmem:[%s1026_s3 + $0x190] sm:$0xff] %v334_v2  ;;  %399 = vst [vmem:[%s1026_s3 + $0x198] sm:$0xff] %v335_v3  ;;  %v536_v12 = vunpack.c.l.bf16 %v574_v63  ;;  %v537_v13 = vunpack.c.h.bf16 %v574_v63 }
  0x3b   :  { %400 = vst [vmem:[%s1026_s3 + $0x1a0] sm:$0xff] %v336_v4  ;;  %401 = vst [vmem:[%s1026_s3 + $0x1a8] sm:$0xff] %v337_v5  ;;  %v540_v14 = vunpack.c.l.bf16 %v575_v0  ;;  %v541_v15 = vunpack.c.h.bf16 %v575_v0  ;;  %v205_v16 = vmul.f32 %v532_v10, %v603_v1  ;;  %v206_v17 = vmul.f32 %v533_v11, %v603_v1 }
  0x3c   :  { %402 = vst [vmem:[%s1026_s3 + $0x1b0] sm:$0xff] %v338_v8  ;;  %403 = vst [vmem:[%s1026_s3 + $0x1b8] sm:$0xff] %v339_v9  ;;  %v544_v18 = vunpack.c.l.bf16 %v576_v6  ;;  %v545_v19 = vunpack.c.h.bf16 %v576_v6  ;;  %v207_v20 = vmul.f32 %v536_v12, %v603_v1  ;;  %v208_v21 = vmul.f32 %v537_v13, %v603_v1 }
  0x3d   :  { %v209_v22 = vmul.f32 %v540_v14, %v603_v1  ;;  %v210_v23 = vmul.f32 %v541_v15, %v603_v1  ;;  %v276_v24 = vadd.f32 %v617_v7, %v205_v16  ;;  %v277_v25 = vadd.f32 %v617_v7, %v206_v17 }
  0x3e   :  { %v211_v26 = vmul.f32 %v544_v18, %v603_v1  ;;  %v212_v27 = vmul.f32 %v545_v19, %v603_v1  ;;  %v278_v28 = vadd.f32 %v617_v7, %v207_v20  ;;  %v279_v29 = vadd.f32 %v617_v7, %v208_v21 }
  0x3f   :  { %v280_v30 = vadd.f32 %v617_v7, %v209_v22  ;;  %v281_v31 = vadd.f32 %v617_v7, %v210_v23  ;;  %v340_v32 = vmax.f32 %v276_v24, 0.0  ;;  %v341_v33 = vmax.f32 %v277_v25, 0.0 }
  0x40   :  { %v282_v34 = vadd.f32 %v617_v7, %v211_v26  ;;  %v283_v35 = vadd.f32 %v617_v7, %v212_v27  ;;  %v342_v36 = vmax.f32 %v278_v28, 0.0  ;;  %v343_v37 = vmax.f32 %v279_v29, 0.0 }
  0x41   :  { %v344_v38 = vmax.f32 %v280_v30, 0.0  ;;  %v345_v39 = vmax.f32 %v281_v31, 0.0  ;;  %404 = vst [vmem:[%s1026_s3 + $0x1c0] sm:$0xff] %v340_v32  ;;  %405 = vst [vmem:[%s1026_s3 + $0x1c8] sm:$0xff] %v341_v33 }
  0x42   :  { %v346_v1 = vmax.f32 %v282_v34, 0.0  ;;  %v347_v40 = vmax.f32 %v283_v35, 0.0  ;;  %406 = vst [vmem:[%s1026_s3 + $0x1d0] sm:$0xff] %v342_v36  ;;  %407 = vst [vmem:[%s1026_s3 + $0x1d8] sm:$0xff] %v343_v37 }
  0x43   :  { %408 = vst [vmem:[%s1026_s3 + $0x1e0] sm:$0xff] %v344_v38  ;;  %409 = vst [vmem:[%s1026_s3 + $0x1e8] sm:$0xff] %v345_v39 }
  0x44   :  { %410 = vst [vmem:[%s1026_s3 + $0x1f0] sm:$0xff] %v346_v1  ;;  %411 = vst [vmem:[%s1026_s3 + $0x1f8] sm:$0xff] %v347_v40 }

// kernel: conv_bn_relu.2
= control target key start
LH: loop header
LB: loop body
LE: loop exit
PB: predicated region body
PF: predicated region fallthrough
CT: control target
= control target key end

     0   :  { %vm263_vm0 = vcmask 392192   ;;  %s2173_s1 = inlined_call_operand.vmem [shape: bf16[48,128], index: 1, kind: input, shape index: {}]   ;;  %s2174_s0 = inlined_call_operand.vmem [shape: bf16[512,48], index: 0, kind: input, shape index: {}]   ;;  %s2175_s2 = inlined_call_operand.vmem [shape: bf16[512,128], index: 2, kind: output, shape index: {0}]   ;;  %s2176_s3 = inlined_call_operand.vmem [shape: f32[8,128], index: 3, kind: output, shape index: {1}]   ;;  %s2177_s4 = inlined_call_operand.vmem [shape: f32[8,128], index: 4, kind: output, shape index: {2}]  }
   0x1   :  { %v1682_v0 = vld [vmem:[%s2173_s1 + $0x10] sm:$0xff]   ;;  %v1683_v1 = vld [vmem:[%s2173_s1 + $0x8] sm:$0xff]   ;;  %v1685_v2 = vld [vmem:[%s2174_s0] sm:$0xff]  }
   0x2   :  { %1606 = vmatprep.subr.bf16.mxu0 %v1682_v0  ;;  %1676 = vmatprep.subr.bf16.mxu1 %v1682_v0  ;;  %v1684_v3 = vld [vmem:[%s2173_s1] sm:$0xff]   ;;  %v1686_v4 = vld [vmem:[%s2174_s0 + $0x8] sm:$0xff]   ;;  %v1687_v5 = vld [vmem:[%s2174_s0 + $0x10] sm:$0xff]  }
   0x3   :  { %1607 = vmatpush3.bf16.msra.mxu0 %v1682_v0  ;;  %1679 = vmatpush3.bf16.msra.mxu1 %v1682_v0  ;;  %v1688_v6 = vld [vmem:[%s2174_s0 + $0x18] sm:$0xff]   ;;  %v1689_v7 = vld [vmem:[%s2174_s0 + $0x20] sm:$0xff]   ;;  %v1702_v9 = vld [vmem:[%s2174_s0 + $0x88] sm:$0xff]  }
   0x4   :  { %1608 = vmatprep.subr.bf16.mxu0 %v1683_v1  ;;  %1677 = vmatprep.subr.bf16.mxu1 %v1683_v1  ;;  %v1701_v8 = vld [vmem:[%s2174_s0 + $0x80] sm:$0xff]   ;;  %v1703_v10 = vld [vmem:[%s2174_s0 + $0x90] sm:$0xff]   ;;  %v1690_v11 = vld [vmem:[%s2174_s0 + $0x28] sm:$0xff]  }
   0x5   :  { %1612 = vmatprep.mubr.msk.bf16.mxu0 %vm263_vm0, %v1685_v2  ;;  %1644 = vmatprep.mubr.msk.bf16.mxu1 %vm263_vm0, %v1701_v8  ;;  %v1691_v12 = vld [vmem:[%s2174_s0 + $0x30] sm:$0xff]   ;;  %v1704_v13 = vld [vmem:[%s2174_s0 + $0x98] sm:$0xff]   ;;  %v1705_v14 = vld [vmem:[%s2174_s0 + $0xa0] sm:$0xff]  }
   0x6   :  { %v1692_v15 = vld [vmem:[%s2174_s0 + $0x38] sm:$0xff]   ;;  %v1706_v16 = vld [vmem:[%s2174_s0 + $0xa8] sm:$0xff]   ;;  %v1693_v17 = vld [vmem:[%s2174_s0 + $0x40] sm:$0xff]  }
   0x7   :  { %1609 = vmatpush3.bf16.msra.mxu0 %v1683_v1  ;;  %1680 = vmatpush3.bf16.msra.mxu1 %v1683_v1  ;;  %v1707_v18 = vld [vmem:[%s2174_s0 + $0xb0] sm:$0xff]   ;;  %v1694_v19 = vld [vmem:[%s2174_s0 + $0x48] sm:$0xff]   ;;  %v1708_v20 = vld [vmem:[%s2174_s0 + $0xb8] sm:$0xff]  }
   0x8   :  { %1610 = vmatprep.subr.bf16.mxu0 %v1684_v3  ;;  %1678 = vmatprep.subr.bf16.mxu1 %v1684_v3  ;;  %v1695_v21 = vld [vmem:[%s2174_s0 + $0x50] sm:$0xff]   ;;  %v1709_v22 = vld [vmem:[%s2174_s0 + $0xc0] sm:$0xff]   ;;  %v1696_v23 = vld [vmem:[%s2174_s0 + $0x58] sm:$0xff]  }
   0x9   :  { %v1710_v24 = vld [vmem:[%s2174_s0 + $0xc8] sm:$0xff]   ;;  %v1697_v25 = vld [vmem:[%s2174_s0 + $0x60] sm:$0xff]   ;;  %v1711_v26 = vld [vmem:[%s2174_s0 + $0xd0] sm:$0xff]  }
   0xa   :  { %v1698_v27 = vld [vmem:[%s2174_s0 + $0x68] sm:$0xff]   ;;  %v1712_v28 = vld [vmem:[%s2174_s0 + $0xd8] sm:$0xff]   ;;  %v1699_v29 = vld [vmem:[%s2174_s0 + $0x70] sm:$0xff]  }
   0xb   :  { %1611 = vmatpush3.bf16.msra.mxu0 %v1684_v3  ;;  %1681 = vmatpush3.bf16.msra.mxu1 %v1684_v3  ;;  %v1713_v30 = vld [vmem:[%s2174_s0 + $0xe0] sm:$0xff]   ;;  %v1700_v31 = vld [vmem:[%s2174_s0 + $0x78] sm:$0xff]   ;;  %v1714_v32 = vld [vmem:[%s2174_s0 + $0xe8] sm:$0xff]  }
   0xc   :  { %v1715_v33 = vld [vmem:[%s2174_s0 + $0xf0] sm:$0xff]   ;;  %v1716_v34 = vld [vmem:[%s2174_s0 + $0xf8] sm:$0xff]  }
   0xe   :  { %1613 = vmatmul.mubr.msk.bf16.vlgmr.msra.gmra.mxu0 %vm263_vm0, %v1686_v4  ;;  %1645 = vmatmul.mubr.msk.bf16.vlgmr.msra.gmra.mxu1 %vm263_vm0, %v1702_v9 }
   0xf   :  { %1616 = vmatprep.mubr.msk.bf16.mxu0 %vm263_vm0, %v1687_v5  ;;  %1648 = vmatprep.mubr.msk.bf16.mxu1 %vm263_vm0, %v1703_v10 }
  0x16   :  { %1617 = vmatmul.mubr.msk.bf16.gmra.mxu0 %vm263_vm0, %v1688_v6  ;;  %1649 = vmatmul.mubr.msk.bf16.gmra.mxu1 %vm263_vm0, %v1704_v13 }
  0x17   :  { %1620 = vmatprep.mubr.msk.bf16.mxu0 %vm263_vm0, %v1689_v7  ;;  %1652 = vmatprep.mubr.msk.bf16.mxu1 %vm263_vm0, %v1705_v14 }
  0x1e   :  { %1621 = vmatmul.mubr.msk.bf16.gmra.mxu0 %vm263_vm0, %v1690_v11  ;;  %1653 = vmatmul.mubr.msk.bf16.gmra.mxu1 %vm263_vm0, %v1706_v16 }
  0x1f   :  { %1624 = vmatprep.mubr.msk.bf16.mxu0 %vm263_vm0, %v1691_v12  ;;  %1656 = vmatprep.mubr.msk.bf16.mxu1 %vm263_vm0, %v1707_v18 }
  0x26   :  { %1625 = vmatmul.mubr.msk.bf16.gmra.mxu0 %vm263_vm0, %v1692_v15  ;;  %1657 = vmatmul.mubr.msk.bf16.gmra.mxu1 %vm263_vm0, %v1708_v20 }
  0x27   :  { %1628 = vmatprep.mubr.msk.bf16.mxu0 %vm263_vm0, %v1693_v17  ;;  %1660 = vmatprep.mubr.msk.bf16.mxu1 %vm263_vm0, %v1709_v22 }
  0x2e   :  { %1629 = vmatmul.mubr.msk.bf16.gmra.mxu0 %vm263_vm0, %v1694_v19  ;;  %1661 = vmatmul.mubr.msk.bf16.gmra.mxu1 %vm263_vm0, %v1710_v24 }
  0x2f   :  { %1632 = vmatprep.mubr.msk.bf16.mxu0 %vm263_vm0, %v1695_v21  ;;  %1664 = vmatprep.mubr.msk.bf16.mxu1 %vm263_vm0, %v1711_v26 }
  0x36   :  { %1633 = vmatmul.mubr.msk.bf16.gmra.mxu0 %vm263_vm0, %v1696_v23  ;;  %1665 = vmatmul.mubr.msk.bf16.gmra.mxu1 %vm263_vm0, %v1712_v28 }
  0x37   :  { %1636 = vmatprep.mubr.msk.bf16.mxu0 %vm263_vm0, %v1697_v25  ;;  %1668 = vmatprep.mubr.msk.bf16.mxu1 %vm263_vm0, %v1713_v30 }
  0x3e   :  { %1637 = vmatmul.mubr.msk.bf16.gmra.mxu0 %vm263_vm0, %v1698_v27  ;;  %1669 = vmatmul.mubr.msk.bf16.gmra.mxu1 %vm263_vm0, %v1714_v32 }
  0x3f   :  { %1640 = vmatprep.mubr.msk.bf16.mxu0 %vm263_vm0, %v1699_v29  ;;  %1672 = vmatprep.mubr.msk.bf16.mxu1 %vm263_vm0, %v1715_v33 }
  0x46   :  { %1641 = vmatmul.mubr.msk.bf16.gmra.mxu0 %vm263_vm0, %v1700_v31  ;;  %1673 = vmatmul.mubr.msk.bf16.gmra.mxu1 %vm263_vm0, %v1716_v34 }
  0xce   :  { %v1614_v35 = vpop.f32.mrf.mxu0  ;;  %v1882_v45 = vpop.f32.mrf.mxu1 }
  0xcf   :  { %v1040_v46 = vmul.f32 %v1614_v35, %v1614_v35 }
  0xd0   :  { %v394_v36 = vpop.f32.mrf.mxu0  ;;  %v1887_v50 = vpop.f32.mrf.mxu1 }
  0xd1   :  { %v1038_v40 = vmul.f32 %v394_v36, %v394_v36 }
  0xd2   :  { %v1615_v37 = vpop.f32.mrf.mxu0  ;;  %v1889_v55 = vpop.f32.mrf.mxu1 }
  0xd3   :  { %v1388_v38 = vpack.c.bf16 %v1615_v37, %v1614_v35  ;;  %v1041_v51 = vmul.f32 %v1615_v37, %v1615_v37  ;;  %v1468_v61 = vpack.c.bf16 %v1889_v55, %v1882_v45 }
  0xd4   :  { %v397_v39 = vpop.f32.mrf.mxu0  ;;  %v1893_v62 = vpop.f32.mrf.mxu1 }
  0xd5   :  { %1540 = vst [vmem:[%s2175_s2 + $0x8] sm:$0xff] %v1388_v38   ;;  %v1383_v41 = vpack.c.bf16 %v397_v39, %v394_v36  ;;  %v969_v42 = vadd.f32 %v397_v39, %v394_v36  ;;  %v1039_v43 = vmul.f32 %v397_v39, %v397_v39  ;;  %1556 = vst [vmem:[%s2175_s2 + $0x88] sm:$0xff] %v1468_v61  }
  0xd6   :  { %v1618_v44 = vpop.f32.mrf.mxu0  ;;  %v1463_v4 = vpack.c.bf16 %v1893_v62, %v1887_v50  ;;  %v1903_v5 = vpop.f32.mrf.mxu1 }
  0xd7   :  { %1384 = vst [vmem:[%s2175_s2] sm:$0xff] %v1383_v41   ;;  %v970_v47 = vadd.f32 %v1614_v35, %v969_v42  ;;  %v1102_v48 = vadd.f32 %v1039_v43, %v1038_v40  ;;  %v1044_v6 = vmul.f32 %v1618_v44, %v1618_v44 }
  0xd8   :  { %v410_v49 = vpop.f32.mrf.mxu0  ;;  %1555 = vst [vmem:[%s2175_s2 + $0x80] sm:$0xff] %v1463_v4   ;;  %v1911_v10 = vpop.f32.mrf.mxu1 }
  0xd9   :  { %v1103_v52 = vadd.f32 %v1102_v48, %v1040_v46  ;;  %v971_v53 = vadd.f32 %v1615_v37, %v970_v47  ;;  %v1042_v57 = vmul.f32 %v410_v49, %v410_v49 }
  0xda   :  { %v1619_v54 = vpop.f32.mrf.mxu0  ;;  %v1913_v15 = vpop.f32.mrf.mxu1 }
  0xdb   :  { %v972_v56 = vadd.f32 %v971_v53, %v410_v49  ;;  %v1104_v58 = vadd.f32 %v1103_v52, %v1041_v51  ;;  %v1398_v59 = vpack.c.bf16 %v1619_v54, %v1618_v44  ;;  %v1045_v11 = vmul.f32 %v1619_v54, %v1619_v54 }
  0xdc   :  { %v413_v60 = vpop.f32.mrf.mxu0  ;;  %v1478_v21 = vpack.c.bf16 %v1913_v15, %v1903_v5  ;;  %v1917_v22 = vpop.f32.mrf.mxu1 }
  0xdd   :  { %v1105_v63 = vadd.f32 %v1104_v58, %v1042_v57  ;;  %1542 = vst [vmem:[%s2175_s2 + $0x18] sm:$0xff] %v1398_v59   ;;  %v1393_v0 = vpack.c.bf16 %v413_v60, %v410_v49  ;;  %v973_v1 = vadd.f32 %v972_v56, %v413_v60  ;;  %v1043_v2 = vmul.f32 %v413_v60, %v413_v60 }
  0xde   :  { %v1622_v3 = vpop.f32.mrf.mxu0  ;;  %1558 = vst [vmem:[%s2175_s2 + $0x98] sm:$0xff] %v1478_v21   ;;  %v1473_v28 = vpack.c.bf16 %v1917_v22, %v1911_v10  ;;  %v1927_v29 = vpop.f32.mrf.mxu1 }
  0xdf   :  { %1541 = vst [vmem:[%s2175_s2 + $0x10] sm:$0xff] %v1393_v0   ;;  %v974_v7 = vadd.f32 %v1618_v44, %v973_v1  ;;  %v1106_v8 = vadd.f32 %v1105_v63, %v1043_v2  ;;  %v1048_v30 = vmul.f32 %v1622_v3, %v1622_v3 }
  0xe0   :  { %v426_v9 = vpop.f32.mrf.mxu0  ;;  %1557 = vst [vmem:[%s2175_s2 + $0x90] sm:$0xff] %v1473_v28   ;;  %v1935_v34 = vpop.f32.mrf.mxu1 }
  0xe1   :  { %v1107_v12 = vadd.f32 %v1106_v8, %v1044_v6  ;;  %v975_v13 = vadd.f32 %v1619_v54, %v974_v7  ;;  %v1046_v17 = vmul.f32 %v426_v9, %v426_v9 }
  0xe2   :  { %v1623_v14 = vpop.f32.mrf.mxu0  ;;  %v1937_v39 = vpop.f32.mrf.mxu1 }
  0xe3   :  { %v976_v16 = vadd.f32 %v975_v13, %v426_v9  ;;  %v1108_v18 = vadd.f32 %v1107_v12, %v1045_v11  ;;  %v1408_v19 = vpack.c.bf16 %v1623_v14, %v1622_v3  ;;  %v1049_v35 = vmul.f32 %v1623_v14, %v1623_v14 }
  0xe4   :  { %v429_v20 = vpop.f32.mrf.mxu0  ;;  %v1488_v46 = vpack.c.bf16 %v1937_v39, %v1927_v29  ;;  %v1941_v47 = vpop.f32.mrf.mxu1 }
  0xe5   :  { %v1109_v23 = vadd.f32 %v1108_v18, %v1046_v17  ;;  %1544 = vst [vmem:[%s2175_s2 + $0x28] sm:$0xff] %v1408_v19   ;;  %v1403_v24 = vpack.c.bf16 %v429_v20, %v426_v9  ;;  %v977_v25 = vadd.f32 %v976_v16, %v429_v20  ;;  %v1047_v26 = vmul.f32 %v429_v20, %v429_v20 }
  0xe6   :  { %v1626_v27 = vpop.f32.mrf.mxu0  ;;  %1560 = vst [vmem:[%s2175_s2 + $0xa8] sm:$0xff] %v1488_v46   ;;  %v1483_v54 = vpack.c.bf16 %v1941_v47, %v1935_v34  ;;  %v1951_v56 = vpop.f32.mrf.mxu1 }
  0xe7   :  { %1543 = vst [vmem:[%s2175_s2 + $0x20] sm:$0xff] %v1403_v24   ;;  %v978_v31 = vadd.f32 %v1622_v3, %v977_v25  ;;  %v1110_v32 = vadd.f32 %v1109_v23, %v1047_v26  ;;  %v1052_v57 = vmul.f32 %v1626_v27, %v1626_v27 }
  0xe8   :  { %v442_v33 = vpop.f32.mrf.mxu0  ;;  %1559 = vst [vmem:[%s2175_s2 + $0xa0] sm:$0xff] %v1483_v54   ;;  %v1959_v61 = vpop.f32.mrf.mxu1 }
  0xe9   :  { %v1111_v36 = vadd.f32 %v1110_v32, %v1048_v30  ;;  %v979_v37 = vadd.f32 %v1623_v14, %v978_v31  ;;  %v1050_v41 = vmul.f32 %v442_v33, %v442_v33 }
  0xea   :  { %v1627_v38 = vpop.f32.mrf.mxu0  ;;  %v1961_v3 = vpop.f32.mrf.mxu1 }
  0xeb   :  { %v980_v40 = vadd.f32 %v979_v37, %v442_v33  ;;  %v1112_v42 = vadd.f32 %v1111_v36, %v1049_v35  ;;  %v1418_v43 = vpack.c.bf16 %v1627_v38, %v1626_v27  ;;  %v1053_v63 = vmul.f32 %v1627_v38, %v1627_v38 }
  0xec   :  { %v445_v44 = vpop.f32.mrf.mxu0  ;;  %v1498_v11 = vpack.c.bf16 %v1961_v3, %v1951_v56  ;;  %v1965_v12 = vpop.f32.mrf.mxu1 }
  0xed   :  { %v1113_v48 = vadd.f32 %v1112_v42, %v1050_v41  ;;  %1546 = vst [vmem:[%s2175_s2 + $0x38] sm:$0xff] %v1418_v43   ;;  %v1413_v49 = vpack.c.bf16 %v445_v44, %v442_v33  ;;  %v981_v51 = vadd.f32 %v980_v40, %v445_v44  ;;  %v1051_v52 = vmul.f32 %v445_v44, %v445_v44 }
  0xee   :  { %v1630_v53 = vpop.f32.mrf.mxu0  ;;  %1562 = vst [vmem:[%s2175_s2 + $0xb8] sm:$0xff] %v1498_v11   ;;  %v1493_v19 = vpack.c.bf16 %v1965_v12, %v1959_v61  ;;  %v1975_v20 = vpop.f32.mrf.mxu1 }
  0xef   :  { %1545 = vst [vmem:[%s2175_s2 + $0x30] sm:$0xff] %v1413_v49   ;;  %v982_v58 = vadd.f32 %v1626_v27, %v981_v51  ;;  %v1114_v59 = vadd.f32 %v1113_v48, %v1051_v52  ;;  %v1056_v21 = vmul.f32 %v1630_v53, %v1630_v53 }
  0xf0   :  { %v458_v60 = vpop.f32.mrf.mxu0  ;;  %1561 = vst [vmem:[%s2175_s2 + $0xb0] sm:$0xff] %v1493_v19   ;;  %v1983_v26 = vpop.f32.mrf.mxu1 }
  0xf1   :  { %v1115_v0 = vadd.f32 %v1114_v59, %v1052_v57  ;;  %v983_v1 = vadd.f32 %v1627_v38, %v982_v58  ;;  %v1054_v6 = vmul.f32 %v458_v60, %v458_v60 }
  0xf2   :  { %v1631_v2 = vpop.f32.mrf.mxu0  ;;  %v1985_v32 = vpop.f32.mrf.mxu1 }
  0xf3   :  { %v984_v4 = vadd.f32 %v983_v1, %v458_v60  ;;  %v1116_v7 = vadd.f32 %v1115_v0, %v1053_v63  ;;  %v1428_v8 = vpack.c.bf16 %v1631_v2, %v1630_v53  ;;  %v1057_v27 = vmul.f32 %v1631_v2, %v1631_v2 }
  0xf4   :  { %v461_v9 = vpop.f32.mrf.mxu0  ;;  %v1508_v40 = vpack.c.bf16 %v1985_v32, %v1975_v20  ;;  %v1989_v41 = vpop.f32.mrf.mxu1 }
  0xf5   :  { %v1117_v13 = vadd.f32 %v1116_v7, %v1054_v6  ;;  %1548 = vst [vmem:[%s2175_s2 + $0x48] sm:$0xff] %v1428_v8   ;;  %v1423_v14 = vpack.c.bf16 %v461_v9, %v458_v60  ;;  %v985_v16 = vadd.f32 %v984_v4, %v461_v9  ;;  %v1055_v17 = vmul.f32 %v461_v9, %v461_v9 }
  0xf6   :  { %v1634_v18 = vpop.f32.mrf.mxu0  ;;  %1564 = vst [vmem:[%s2175_s2 + $0xc8] sm:$0xff] %v1508_v40   ;;  %v1503_v49 = vpack.c.bf16 %v1989_v41, %v1983_v26  ;;  %v1999_v51 = vpop.f32.mrf.mxu1 }
  0xf7   :  { %1547 = vst [vmem:[%s2175_s2 + $0x40] sm:$0xff] %v1423_v14   ;;  %v986_v23 = vadd.f32 %v1630_v53, %v985_v16  ;;  %v1118_v24 = vadd.f32 %v1117_v13, %v1055_v17  ;;  %v1060_v52 = vmul.f32 %v1634_v18, %v1634_v18 }
  0xf8   :  { %v474_v25 = vpop.f32.mrf.mxu0  ;;  %1563 = vst [vmem:[%s2175_s2 + $0xc0] sm:$0xff] %v1503_v49   ;;  %v2007_v58 = vpop.f32.mrf.mxu1 }
  0xf9   :  { %v1119_v28 = vadd.f32 %v1118_v24, %v1056_v21  ;;  %v987_v30 = vadd.f32 %v1631_v2, %v986_v23  ;;  %v1058_v35 = vmul.f32 %v474_v25, %v474_v25 }
  0xfa   :  { %v1635_v31 = vpop.f32.mrf.mxu0  ;;  %v2009_v1 = vpop.f32.mrf.mxu1 }
  0xfb   :  { %v988_v33 = vadd.f32 %v987_v30, %v474_v25  ;;  %v1120_v36 = vadd.f32 %v1119_v28, %v1057_v27  ;;  %v1438_v37 = vpack.c.bf16 %v1635_v31, %v1634_v18  ;;  %v1061_v59 = vmul.f32 %v1635_v31, %v1635_v31 }
  0xfc   :  { %v477_v38 = vpop.f32.mrf.mxu0  ;;  %v1518_v9 = vpack.c.bf16 %v2009_v1, %v1999_v51  ;;  %v2013_v11 = vpop.f32.mrf.mxu1 }
  0xfd   :  { %v1121_v42 = vadd.f32 %v1120_v36, %v1058_v35  ;;  %1550 = vst [vmem:[%s2175_s2 + $0x58] sm:$0xff] %v1438_v37   ;;  %v1433_v43 = vpack.c.bf16 %v477_v38, %v474_v25  ;;  %v989_v44 = vadd.f32 %v988_v33, %v477_v38  ;;  %v1059_v46 = vmul.f32 %v477_v38, %v477_v38 }
  0xfe   :  { %v1638_v48 = vpop.f32.mrf.mxu0  ;;  %1566 = vst [vmem:[%s2175_s2 + $0xd8] sm:$0xff] %v1518_v9   ;;  %v1513_v19 = vpack.c.bf16 %v2013_v11, %v2007_v58  ;;  %v2023_v21 = vpop.f32.mrf.mxu1 }
  0xff   :  { %1549 = vst [vmem:[%s2175_s2 + $0x50] sm:$0xff] %v1433_v43   ;;  %v990_v53 = vadd.f32 %v1634_v18, %v989_v44  ;;  %v1122_v54 = vadd.f32 %v1121_v42, %v1059_v46  ;;  %v1064_v23 = vmul.f32 %v1638_v48, %v1638_v48 }
 0x100   :  { %v490_v57 = vpop.f32.mrf.mxu0  ;;  %1565 = vst [vmem:[%s2175_s2 + $0xd0] sm:$0xff] %v1513_v19   ;;  %v2031_v28 = vpop.f32.mrf.mxu1 }
 0x101   :  { %v1123_v60 = vadd.f32 %v1122_v54, %v1060_v52  ;;  %v991_v63 = vadd.f32 %v1635_v31, %v990_v53  ;;  %v1062_v4 = vmul.f32 %v490_v57, %v490_v57 }
 0x102   :  { %v1639_v0 = vpop.f32.mrf.mxu0  ;;  %v2033_v36 = vpop.f32.mrf.mxu1 }
 0x103   :  { %v992_v2 = vadd.f32 %v991_v63, %v490_v57  ;;  %v1124_v6 = vadd.f32 %v1123_v60, %v1061_v59  ;;  %v1448_v7 = vpack.c.bf16 %v1639_v0, %v1638_v48  ;;  %v1065_v30 = vmul.f32 %v1639_v0, %v1639_v0 }
 0x104   :  { %v493_v8 = vpop.f32.mrf.mxu0  ;;  %v1528_v44 = vpack.c.bf16 %v2033_v36, %v2023_v21  ;;  %v2037_v46 = vpop.f32.mrf.mxu1 }
 0x105   :  { %v1125_v13 = vadd.f32 %v1124_v6, %v1062_v4  ;;  %1552 = vst [vmem:[%s2175_s2 + $0x68] sm:$0xff] %v1448_v7   ;;  %v1443_v14 = vpack.c.bf16 %v493_v8, %v490_v57  ;;  %v993_v16 = vadd.f32 %v992_v2, %v493_v8  ;;  %v1063_v17 = vmul.f32 %v493_v8, %v493_v8 }
 0x106   :  { %v1642_v18 = vpop.f32.mrf.mxu0  ;;  %1568 = vst [vmem:[%s2175_s2 + $0xe8] sm:$0xff] %v1528_v44   ;;  %v1523_v54 = vpack.c.bf16 %v2037_v46, %v2031_v28  ;;  %v2047_v57 = vpop.f32.mrf.mxu1  ;;  %v1070_v8 = vmul.f32 %v1887_v50, %v1887_v50 }
 0x107   :  { %1551 = vst [vmem:[%s2175_s2 + $0x60] sm:$0xff] %v1443_v14   ;;  %v994_v24 = vadd.f32 %v1638_v48, %v993_v16  ;;  %v1126_v25 = vadd.f32 %v1125_v13, %v1063_v17  ;;  %v1068_v59 = vmul.f32 %v1642_v18, %v1642_v18 }
 0x108   :  { %v506_v27 = vpop.f32.mrf.mxu0  ;;  %1567 = vst [vmem:[%s2175_s2 + $0xe0] sm:$0xff] %v1523_v54   ;;  %v1079_v54 = vmul.f32 %v1941_v47, %v1941_v47 }
 0x109   :  { %v1127_v31 = vadd.f32 %v1126_v25, %v1064_v23  ;;  %v995_v33 = vadd.f32 %v1639_v0, %v994_v24  ;;  %v1066_v38 = vmul.f32 %v506_v27, %v506_v27  ;;  %v2055_v0 = vpop.f32.mrf.mxu1 }
 0x10a   :  { %v1643_v35 = vpop.f32.mrf.mxu0 }
 0x10b   :  { %v996_v37 = vadd.f32 %v995_v33, %v506_v27  ;;  %v1128_v40 = vadd.f32 %v1127_v31, %v1065_v30  ;;  %v1458_v42 = vpack.c.bf16 %v1643_v35, %v1642_v18  ;;  %v1069_v2 = vmul.f32 %v1643_v35, %v1643_v35  ;;  %v2057_v7 = vpop.f32.mrf.mxu1 }
 0x10c   :  { %v509_v43 = vpop.f32.mrf.mxu0  ;;  %v1538_v14 = vpack.c.bf16 %v2057_v7, %v2047_v57  ;;  %v1074_v33 = vmul.f32 %v1911_v10, %v1911_v10 }
 0x10d   :  { %v1129_v48 = vadd.f32 %v1128_v40, %v1066_v38  ;;  %1554 = vst [vmem:[%s2175_s2 + $0x78] sm:$0xff] %v1458_v42   ;;  %v1453_v49 = vpack.c.bf16 %v509_v43, %v506_v27  ;;  %v997_v52 = vadd.f32 %v996_v37, %v509_v43  ;;  %v1067_v53 = vmul.f32 %v509_v43, %v509_v43  ;;  %v2064_v16 = vpop.f32.mrf.mxu1 }
 0x10e   :  { %1570 = vst [vmem:[%s2175_s2 + $0xf8] sm:$0xff] %v1538_v14   ;;  %v1533_v23 = vpack.c.bf16 %v2064_v16, %v2055_v0  ;;  %v1075_v38 = vmul.f32 %v1917_v22, %v1917_v22  ;;  %v1076_v40 = vmul.f32 %v1903_v5, %v1903_v5 }
 0x10f   :  { %1553 = vst [vmem:[%s2175_s2 + $0x70] sm:$0xff] %v1453_v49   ;;  %v998_v60 = vadd.f32 %v1642_v18, %v997_v52  ;;  %v1130_v63 = vadd.f32 %v1129_v48, %v1067_v53  ;;  %v1071_v18 = vmul.f32 %v1893_v62, %v1893_v62  ;;  %v1078_v49 = vmul.f32 %v1935_v34, %v1935_v34 }
 0x110   :  { %1569 = vst [vmem:[%s2175_s2 + $0xf0] sm:$0xff] %v1533_v23  }
 0x111   :  { %v999_v4 = vadd.f32 %v1643_v35, %v998_v60  ;;  %v1131_v6 = vadd.f32 %v1130_v63, %v1068_v59 }
 0x113   :  { %v1132_v9 = vadd.f32 %v1131_v6, %v1069_v2  ;;  %v1000_v13 = vadd.f32 %v999_v4, %v1887_v50  ;;  %v1072_v50 = vmul.f32 %v1882_v45, %v1882_v45  ;;  %v1082_v4 = vmul.f32 %v1959_v61, %v1959_v61 }
 0x115   :  { %v1001_v17 = vadd.f32 %v1000_v13, %v1893_v62  ;;  %v1133_v19 = vadd.f32 %v1132_v9, %v1070_v8  ;;  %v1073_v62 = vmul.f32 %v1889_v55, %v1889_v55  ;;  %v1083_v9 = vmul.f32 %v1965_v12, %v1965_v12 }
 0x117   :  { %v1002_v24 = vadd.f32 %v1882_v45, %v1001_v17  ;;  %v1134_v25 = vadd.f32 %v1133_v19, %v1071_v18  ;;  %v1086_v19 = vmul.f32 %v1983_v26, %v1983_v26 }
 0x119   :  { %v1135_v27 = vadd.f32 %v1134_v25, %v1072_v50  ;;  %v1003_v30 = vadd.f32 %v1889_v55, %v1002_v24  ;;  %v1077_v55 = vmul.f32 %v1913_v15, %v1913_v15  ;;  %v1087_v24 = vmul.f32 %v1989_v41, %v1989_v41 }
 0x11b   :  { %v1004_v31 = vadd.f32 %v1003_v30, %v1911_v10  ;;  %v1136_v35 = vadd.f32 %v1135_v27, %v1073_v62 }
 0x11d   :  { %v1137_v37 = vadd.f32 %v1136_v35, %v1074_v33  ;;  %v1005_v45 = vadd.f32 %v1004_v31, %v1917_v22  ;;  %v1090_v31 = vmul.f32 %v2007_v58, %v2007_v58 }
 0x11f   :  { %v1006_v42 = vadd.f32 %v1903_v5, %v1005_v45  ;;  %v1138_v43 = vadd.f32 %v1137_v37, %v1075_v38  ;;  %v1080_v5 = vmul.f32 %v1927_v29, %v1927_v29  ;;  %v1091_v37 = vmul.f32 %v2013_v11, %v2013_v11 }
 0x121   :  { %v1139_v44 = vadd.f32 %v1138_v43, %v1076_v40  ;;  %v1007_v48 = vadd.f32 %v1913_v15, %v1006_v42  ;;  %v1081_v15 = vmul.f32 %v1937_v39, %v1937_v39  ;;  %v1094_v43 = vmul.f32 %v2031_v28, %v2031_v28 }
 0x123   :  { %v1008_v10 = vadd.f32 %v1007_v48, %v1935_v34  ;;  %v1140_v52 = vadd.f32 %v1139_v44, %v1077_v55  ;;  %v1095_v48 = vmul.f32 %v2037_v46, %v2037_v46 }
 0x125   :  { %v1141_v53 = vadd.f32 %v1140_v52, %v1078_v49  ;;  %v1009_v22 = vadd.f32 %v1008_v10, %v1941_v47 }
 0x127   :  { %v1010_v59 = vadd.f32 %v1927_v29, %v1009_v22  ;;  %v1142_v60 = vadd.f32 %v1141_v53, %v1079_v54  ;;  %v1084_v29 = vmul.f32 %v1951_v56, %v1951_v56  ;;  %v1098_v22 = vmul.f32 %v2055_v0, %v2055_v0 }
 0x129   :  { %v1143_v63 = vadd.f32 %v1142_v60, %v1080_v5  ;;  %v1011_v2 = vadd.f32 %v1937_v39, %v1010_v59  ;;  %v1085_v39 = vmul.f32 %v1961_v3, %v1961_v3  ;;  %v1099_v59 = vmul.f32 %v2064_v16, %v2064_v16 }
 0x12b   :  { %v1012_v34 = vadd.f32 %v1011_v2, %v1959_v61  ;;  %v1144_v6 = vadd.f32 %v1143_v63, %v1081_v15 }
 0x12d   :  { %v1145_v8 = vadd.f32 %v1144_v6, %v1082_v4  ;;  %v1013_v47 = vadd.f32 %v1012_v34, %v1965_v12 }
 0x12f   :  { %v1014_v13 = vadd.f32 %v1951_v56, %v1013_v47  ;;  %v1146_v14 = vadd.f32 %v1145_v8, %v1083_v9  ;;  %v1088_v56 = vmul.f32 %v1975_v20, %v1975_v20 }
 0x131   :  { %v1147_v17 = vadd.f32 %v1146_v14, %v1084_v29  ;;  %v1015_v18 = vadd.f32 %v1961_v3, %v1014_v13  ;;  %v1089_v3 = vmul.f32 %v1985_v32, %v1985_v32 }
 0x133   :  { %v1016_v61 = vadd.f32 %v1015_v18, %v1983_v26  ;;  %v1148_v23 = vadd.f32 %v1147_v17, %v1085_v39 }
 0x135   :  { %v1149_v50 = vadd.f32 %v1148_v23, %v1086_v19  ;;  %v1017_v12 = vadd.f32 %v1016_v61, %v1989_v41 }
 0x137   :  { %v1018_v25 = vadd.f32 %v1975_v20, %v1017_v12  ;;  %v1150_v62 = vadd.f32 %v1149_v50, %v1087_v24  ;;  %v1092_v20 = vmul.f32 %v1999_v51, %v1999_v51 }
 0x139   :  { %v1151_v27 = vadd.f32 %v1150_v62, %v1088_v56  ;;  %v1019_v30 = vadd.f32 %v1985_v32, %v1018_v25  ;;  %v1093_v32 = vmul.f32 %v2009_v1, %v2009_v1 }
 0x13b   :  { %v1020_v26 = vadd.f32 %v1019_v30, %v2007_v58  ;;  %v1152_v33 = vadd.f32 %v1151_v27, %v1089_v3 }
 0x13d   :  { %v1153_v35 = vadd.f32 %v1152_v33, %v1090_v31  ;;  %v1021_v41 = vadd.f32 %v1020_v26, %v2013_v11 }
 0x13f   :  { %v1022_v45 = vadd.f32 %v1999_v51, %v1021_v41  ;;  %v1154_v38 = vadd.f32 %v1153_v35, %v1091_v37  ;;  %v1096_v51 = vmul.f32 %v2023_v21, %v2023_v21 }
 0x141   :  { %v1155_v40 = vadd.f32 %v1154_v38, %v1092_v20  ;;  %v1023_v42 = vadd.f32 %v2009_v1, %v1022_v45  ;;  %v1097_v1 = vmul.f32 %v2033_v36, %v2033_v36 }
 0x143   :  { %v1024_v58 = vadd.f32 %v1023_v42, %v2031_v28  ;;  %v1156_v55 = vadd.f32 %v1155_v40, %v1093_v32 }
 0x145   :  { %v1157_v44 = vadd.f32 %v1156_v55, %v1094_v43  ;;  %v1025_v11 = vadd.f32 %v1024_v58, %v2037_v46 }
 0x147   :  { %v1026_v10 = vadd.f32 %v2023_v21, %v1025_v11  ;;  %v1158_v49 = vadd.f32 %v1157_v44, %v1095_v48  ;;  %v1100_v21 = vmul.f32 %v2047_v57, %v2047_v57 }
 0x149   :  { %v1159_v52 = vadd.f32 %v1158_v49, %v1096_v51  ;;  %v1027_v53 = vadd.f32 %v2033_v36, %v1026_v10  ;;  %v1101_v36 = vmul.f32 %v2057_v7, %v2057_v7 }
 0x14b   :  { %v1028_v28 = vadd.f32 %v1027_v53, %v2055_v0  ;;  %v1160_v54 = vadd.f32 %v1159_v52, %v1097_v1 }
 0x14d   :  { %v1161_v5 = vadd.f32 %v1160_v54, %v1098_v22  ;;  %v1029_v46 = vadd.f32 %v1028_v28, %v2064_v16 }
 0x14f   :  { %v1030_v60 = vadd.f32 %v2047_v57, %v1029_v46  ;;  %v1162_v15 = vadd.f32 %v1161_v5, %v1099_v59 }
 0x151   :  { %v1031_v63 = vadd.f32 %v2057_v7, %v1030_v60  ;;  %v1163_v2 = vadd.f32 %v1162_v15, %v1100_v21 }
 0x153   :  { %v1032_v0 = vrot.slane %v1031_v63, 4  ;;  %v1164_v34 = vadd.f32 %v1163_v2, %v1101_v36 }
 0x155   :  { %v1033_v4 = vadd.f32 %v1032_v0, %v1031_v63  ;;  %v1165_v6 = vrot.slane %v1164_v34, 4 }
 0x157   :  { %v1034_v8 = vrot.slane %v1033_v4, 2  ;;  %v1166_v47 = vadd.f32 %v1165_v6, %v1164_v34 }
 0x159   :  { %v1035_v9 = vadd.f32 %v1034_v8, %v1033_v4  ;;  %v1167_v16 = vrot.slane %v1166_v47, 2 }
 0x15b   :  { %v1036_v29 = vrot.slane %v1035_v9, 1  ;;  %v1168_v13 = vadd.f32 %v1167_v16, %v1166_v47 }
 0x15d   :  { %v1037_v14 = vadd.f32 %v1036_v29, %v1035_v9  ;;  %v1169_v39 = vrot.slane %v1168_v13, 1 }
 0x15f   :  { %v1170_v57 = vadd.f32 %v1169_v39, %v1168_v13  ;;  %1171 = vst [vmem:[%s2176_s3] sm:$0xff] %v1037_v14 }
 0x161   :  { %1172 = vst [vmem:[%s2177_s4] sm:$0xff] %v1170_v57 }

</bundles_post_ra>
